<compile_context>
chip_gen: v7x
topology: tpu7x:2x2x1
jax: 0.10.0
libtpu: 0.0.40
codegen_flags: <defaults>
</compile_context>

<pallas_src>
import numpy as np
import jax
import jax.numpy as jnp
from jax.experimental import pallas as pl
from jax.experimental.pallas import tpu as pltpu

H_IN, W_IN = 6, 7          # single-channel input board
C1, C2, C3 = 4, 16, 64     # conv output channels
N_FEAT0 = H_IN * W_IN      # 42
BN_EPS = 1e-5


# ----------------------------- Pallas kernel --------------------------------
def regression_kernel(x_ref, w1_ref, s1_ref, w2_ref, s2_ref, w3_ref, s3_ref,
                      wfc_ref, bfc_ref, out_ref):
    """One batch block: features on sublanes, batch on lanes.

    x_ref  : (42, nb)   input boards, one board per lane (row = h*7 + w)
    w*_ref : (out, in)  dense conv-as-matmul weights (BN scale folded in)
    s*_ref : (out, 1)   folded BN shift, broadcast over the batch lanes
    wfc_ref: (1, 128)   final linear layer (torch flatten order pre-permuted)
    out_ref: (1, nb)    tanh(win-rate logit), batch on the lane axis
    """
    h = x_ref[...]
    # conv1 + BN1 + ReLU : (80,42) @ (42,nb) -> (80,nb)
    h = jnp.maximum(
        jnp.dot(w1_ref[...], h, preferred_element_type=jnp.float32)
        + s1_ref[...], 0.0)
    # conv2 + BN2 + ReLU : (96,80) @ (80,nb) -> (96,nb)
    h = jnp.maximum(
        jnp.dot(w2_ref[...], h, preferred_element_type=jnp.float32)
        + s2_ref[...], 0.0)
    # conv3 + BN3 + ReLU : (128,96) @ (96,nb) -> (128,nb)
    h = jnp.maximum(
        jnp.dot(w3_ref[...], h, preferred_element_type=jnp.float32)
        + s3_ref[...], 0.0)
    # Flatten is implicit (rows already in w*64 + c order); fc + tanh.
    y = jnp.dot(wfc_ref[...], h, preferred_element_type=jnp.float32,
                precision=jax.lax.Precision.HIGHEST) + bfc_ref[...]
    out_ref[...] = jnp.tanh(y)          # (1, nb): single lane-dense store


# --------------------------- parameter plumbing ------------------------------
def _conv_dense(w_oihw, ih, iw):
    """Exact dense matrix of a VALID conv as a linear map from an
    HWC-flattened (ih, iw, cin) input to an HWC-flattened (oh, ow, cout)
    output.  Built once by pushing an identity basis through the conv; this is
    batch-independent parameter preprocessing (HIGHEST precision makes the
    one-hot pass-through bit-exact) — the per-sample conv math itself runs
    inside the Pallas kernel."""
    cout, cin, kh, kw = w_oihw.shape
    oh, ow = ih - kh + 1, iw - kw + 1
    n_in = ih * iw * cin
    basis = jnp.eye(n_in, dtype=jnp.float32).reshape(n_in, ih, iw, cin)
    y = jax.lax.conv_general_dilated(
        basis, w_oihw.astype(jnp.float32), window_strides=(1, 1),
        padding="VALID", dimension_numbers=("NHWC", "OIHW", "NHWC"),
        precision=jax.lax.Precision.HIGHEST)
    return y.reshape(n_in, oh * ow * cout), oh * ow


def _fold_bn_t(w_dense, n_pos, conv_bias, gamma, beta, mean, var):
    """Fold inference-mode BN into the dense conv matrix; return the
    transposed (out_feat, in_feat) weight and the (out_feat, 1) shift."""
    scale = gamma / jnp.sqrt(var + BN_EPS)
    shift = (conv_bias - mean) * scale + beta
    w_t = (w_dense * jnp.tile(scale, (n_pos,))[None, :]).T
    return w_t, jnp.tile(shift, (n_pos,)).reshape(-1, 1)


def regression_forward(x_nchw, p, *, n_blk=256):
    """Forward pass.  x_nchw: (N, 1, 6, 7) float32 -> (N, 1) float32."""
    n = x_nchw.shape[0]
    assert n_blk % 128 == 0
    # Batch lives on the lane axis: pad to full 128-lane vregs; large batches
    # are tiled into n_blk-lane blocks over a "parallel" grid (sharded across
    # both v7x TensorCores; 256 lanes also fills the 256-wide v6e/v7x MXU,
    # use n_blk=128 on v5e).
    n_pad = ((n + 127) // 128) * 128
    if n_pad <= n_blk:
        nb = n_pad                                  # single grid step
    else:
        nb = n_blk
        n_pad = ((n + nb - 1) // nb) * nb
    grid = (n_pad // nb,)

    # Transposed input: (42, n_pad), column = one board, row = h*7 + w.
    x_t = x_nchw.astype(jnp.float32).reshape(n, N_FEAT0).T
    x_t = jnp.pad(x_t, ((0, 0), (0, n_pad - n)))

    w1d, np1 = _conv_dense(p["w1"], H_IN, W_IN)     # (42, 80),  20 positions
    w2d, np2 = _conv_dense(p["w2"], 4, 5)           # (80, 96),   6 positions
    w3d, np3 = _conv_dense(p["w3"], 2, 3)           # (96, 128),  2 positions
    w1t, s1 = _fold_bn_t(w1d, np1, p["b1"], p["g1"], p["beta1"], p["m1"], p["v1"])
    w2t, s2 = _fold_bn_t(w2d, np2, p["b2"], p["g2"], p["beta2"], p["m2"], p["v2"])
    w3t, s3 = _fold_bn_t(w3d, np3, p["b3"], p["g3"], p["beta3"], p["m3"], p["v3"])

    # fc: torch flattens (N, 64, 1, 2) as c*2 + w; kernel rows are w*64 + c.
    wfc = jnp.transpose(p["fcw"].reshape(1, C3, 1, 2),
                        (0, 2, 3, 1)).reshape(1, 2 * C3).astype(jnp.float32)
    bfc = p["fcb"].reshape(1, 1).astype(jnp.float32)

    weights = (w1t, s1, w2t, s2, w3t, s3, wfc, bfc)
    weight_specs = [pl.BlockSpec(w.shape, lambda i: (0, 0)) for w in weights]

    out = pl.pallas_call(
        regression_kernel,
        out_shape=jax.ShapeDtypeStruct((1, n_pad), jnp.float32),
        grid=grid,
        in_specs=[pl.BlockSpec((N_FEAT0, nb), lambda i: (0, i))] + weight_specs,
        out_specs=pl.BlockSpec((1, nb), lambda i: (0, i)),
        compiler_params=pltpu.CompilerParams(
            dimension_semantics=("parallel",)),
    )(x_t, *weights)
    return out[0, :n].reshape(n, 1)


# ------------------------------ reference ------------------------------------
def reference_forward(x_nchw, p):
    prec = jax.lax.Precision.HIGHEST

    def block(h, w, b, gamma, beta, mean, var):
        y = jax.lax.conv_general_dilated(
            h, w, window_strides=(1, 1), padding="VALID",
            dimension_numbers=("NCHW", "OIHW", "NCHW"), precision=prec)
        y = y + b[None, :, None, None]
        y = (y - mean[None, :, None, None]) / jnp.sqrt(var[None, :, None, None] + BN_EPS)
        y = y * gamma[None, :, None, None] + beta[None, :, None, None]
        return jax.nn.relu(y)

    h = block(x_nchw, p["w1"], p["b1"], p["g1"], p["beta1"], p["m1"], p["v1"])
    h = block(h, p["w2"], p["b2"], p["g2"], p["beta2"], p["m2"], p["v2"])
    h = block(h, p["w3"], p["b3"], p["g3"], p["beta3"], p["m3"], p["v3"])
    flat = h.reshape(h.shape[0], -1)                 # torch Flatten on NCHW
    return jnp.tanh(jnp.dot(flat, p["fcw"].T, precision=prec) + p["fcb"][None, :])


# -------------------------------- setup --------------------------------------
def init_params(key):
    ks = jax.random.split(key, 20)
    f32 = jnp.float32

    def bn(k0, k1, k2, k3, c):
        return (1.0 + 0.1 * jax.random.normal(k0, (c,), f32),        # gamma
                0.1 * jax.random.normal(k1, (c,), f32),              # beta
                0.1 * jax.random.normal(k2, (c,), f32),              # running mean
                jax.random.uniform(k3, (c,), f32, 0.5, 1.5))         # running var

    g1, beta1, m1, v1 = bn(ks[2], ks[3], ks[4], ks[5], C1)
    g2, beta2, m2, v2 = bn(ks[8], ks[9], ks[10], ks[11], C2)
    g3, beta3, m3, v3 = bn(ks[14], ks[15], ks[16], ks[17], C3)
    return dict(
        w1=0.3 * jax.random.normal(ks[0], (C1, 1, 3, 3), f32),
        b1=0.1 * jax.random.normal(ks[1], (C1,), f32),
        g1=g1, beta1=beta1, m1=m1, v1=v1,
        w2=0.2 * jax.random.normal(ks[6], (C2, C1, 3, 3), f32),
        b2=0.1 * jax.random.normal(ks[7], (C2,), f32),
        g2=g2, beta2=beta2, m2=m2, v2=v2,
        w3=0.15 * jax.random.normal(ks[12], (C3, C2, 2, 2), f32),
        b3=0.1 * jax.random.normal(ks[13], (C3,), f32),
        g3=g3, beta3=beta3, m3=m3, v3=v3,
        fcw=0.1 * jax.random.normal(ks[18], (1, C3 * 1 * 2), f32),
        fcb=0.05 * jax.random.normal(ks[19], (1,), f32),
    )


if __name__ == "__main__":
    key = jax.random.PRNGKey(0)
    pkey, xkey = jax.random.split(key)
    params = init_params(pkey)
    x = jax.random.normal(xkey, (2, 1, H_IN, W_IN), jnp.float32)   # NCHW like torch

    out = regression_forward(x, params)
    out = jax.block_until_ready(out)

    ref = reference_forward(x, params)
    # The conv matmuls intentionally run at the default (bf16 fast-path) MXU
    # precision per the perf review, so compare against the HIGHEST-precision
    # reference at a correspondingly relaxed tolerance.  Setting
    # precision=HIGHEST on the three conv dots restores <2e-4 agreement.
    np.testing.assert_allclose(np.asarray(out), np.asarray(ref), rtol=2e-2, atol=2e-2)
    print("KERNEL_OK")
</pallas_src>

<mosaic_0001>
module attributes {stable_mosaic.version = 11 : i64} {
  func.func @regression_kernel(%arg0: i32, %arg1: memref<42x128xf32, #tpu.memory_space<vmem>>, %arg2: memref<80x42xf32, #tpu.memory_space<vmem>>, %arg3: memref<80x1xf32, #tpu.memory_space<vmem>>, %arg4: memref<96x80xf32, #tpu.memory_space<vmem>>, %arg5: memref<96x1xf32, #tpu.memory_space<vmem>>, %arg6: memref<128x96xf32, #tpu.memory_space<vmem>>, %arg7: memref<128x1xf32, #tpu.memory_space<vmem>>, %arg8: memref<1x128xf32, #tpu.memory_space<vmem>>, %arg9: memref<1x1xf32, #tpu.memory_space<vmem>>, %arg10: memref<1x128xf32, #tpu.memory_space<vmem>>) attributes {dimension_semantics = [#tpu.dimension_semantics<parallel>], iteration_bounds = array<i64: 1>, scalar_prefetch = 0 : i64, scratch_operands = 0 : i64, tpu.core_type = #tpu.core_type<tc>, window_params = [{transform_indices = @transform_0, window_bounds = array<i64: 42, 128>}, {pipeline_mode = #tpu.pipeline_mode<synchronous>, transform_indices = @transform_1, window_bounds = array<i64: 80, 42>}, {pipeline_mode = #tpu.pipeline_mode<synchronous>, transform_indices = @transform_2, window_bounds = array<i64: 80, 1>}, {pipeline_mode = #tpu.pipeline_mode<synchronous>, transform_indices = @transform_3, window_bounds = array<i64: 96, 80>}, {pipeline_mode = #tpu.pipeline_mode<synchronous>, transform_indices = @transform_4, window_bounds = array<i64: 96, 1>}, {pipeline_mode = #tpu.pipeline_mode<synchronous>, transform_indices = @transform_5, window_bounds = array<i64: 128, 96>}, {pipeline_mode = #tpu.pipeline_mode<synchronous>, transform_indices = @transform_6, window_bounds = array<i64: 128, 1>}, {pipeline_mode = #tpu.pipeline_mode<synchronous>, transform_indices = @transform_7, window_bounds = array<i64: 1, 128>}, {pipeline_mode = #tpu.pipeline_mode<synchronous>, transform_indices = @transform_8, window_bounds = array<i64: 1, 1>}, {transform_indices = @transform_9, window_bounds = array<i64: 1, 128>}]} {
    %c0 = arith.constant 0 : index
    %c0_0 = arith.constant 0 : index
    %0 = vector.load %arg1[%c0, %c0_0] : memref<42x128xf32, #tpu.memory_space<vmem>>, vector<42x128xf32>
    %c0_1 = arith.constant 0 : index
    %c0_2 = arith.constant 0 : index
    %1 = vector.load %arg2[%c0_1, %c0_2] : memref<80x42xf32, #tpu.memory_space<vmem>>, vector<80x42xf32>
    %cst = arith.constant dense<0.000000e+00> : vector<80x128xf32>
    %2 = tpu.matmul %1, %0, %cst {dimension_numbers = #tpu.dot_dimension_numbers<[1], [0], [0], [1], [0, 0, 1, 1], [], []>} : vector<80x42xf32>, vector<42x128xf32>, vector<80x128xf32> -> vector<80x128xf32>
    %c0_3 = arith.constant 0 : index
    %c0_4 = arith.constant 0 : index
    %3 = vector.load %arg3[%c0_3, %c0_4] : memref<80x1xf32, #tpu.memory_space<vmem>>, vector<80x1xf32>
    %4 = vector.broadcast %3 : vector<80x1xf32> to vector<80x128xf32>
    %5 = arith.addf %2, %4 : vector<80x128xf32>
    %cst_5 = arith.constant 0.000000e+00 : f32
    %6 = vector.broadcast %cst_5 : f32 to vector<80x128xf32>
    %7 = arith.maximumf %5, %6 : vector<80x128xf32>
    %c0_6 = arith.constant 0 : index
    %c0_7 = arith.constant 0 : index
    %8 = vector.load %arg4[%c0_6, %c0_7] : memref<96x80xf32, #tpu.memory_space<vmem>>, vector<96x80xf32>
    %cst_8 = arith.constant dense<0.000000e+00> : vector<96x128xf32>
    %9 = tpu.matmul %8, %7, %cst_8 {dimension_numbers = #tpu.dot_dimension_numbers<[1], [0], [0], [1], [0, 0, 1, 1], [], []>} : vector<96x80xf32>, vector<80x128xf32>, vector<96x128xf32> -> vector<96x128xf32>
    %c0_9 = arith.constant 0 : index
    %c0_10 = arith.constant 0 : index
    %10 = vector.load %arg5[%c0_9, %c0_10] : memref<96x1xf32, #tpu.memory_space<vmem>>, vector<96x1xf32>
    %11 = vector.broadcast %10 : vector<96x1xf32> to vector<96x128xf32>
    %12 = arith.addf %9, %11 : vector<96x128xf32>
    %cst_11 = arith.constant 0.000000e+00 : f32
    %13 = vector.broadcast %cst_11 : f32 to vector<96x128xf32>
    %14 = arith.maximumf %12, %13 : vector<96x128xf32>
    %c0_12 = arith.constant 0 : index
    %c0_13 = arith.constant 0 : index
    %15 = vector.load %arg6[%c0_12, %c0_13] : memref<128x96xf32, #tpu.memory_space<vmem>>, vector<128x96xf32>
    %cst_14 = arith.constant dense<0.000000e+00> : vector<128x128xf32>
    %16 = tpu.matmul %15, %14, %cst_14 {dimension_numbers = #tpu.dot_dimension_numbers<[1], [0], [0], [1], [0, 0, 1, 1], [], []>} : vector<128x96xf32>, vector<96x128xf32>, vector<128x128xf32> -> vector<128x128xf32>
    %c0_15 = arith.constant 0 : index
    %c0_16 = arith.constant 0 : index
    %17 = vector.load %arg7[%c0_15, %c0_16] : memref<128x1xf32, #tpu.memory_space<vmem>>, vector<128x1xf32>
    %18 = vector.broadcast %17 : vector<128x1xf32> to vector<128x128xf32>
    %19 = arith.addf %16, %18 : vector<128x128xf32>
    %cst_17 = arith.constant 0.000000e+00 : f32
    %20 = vector.broadcast %cst_17 : f32 to vector<128x128xf32>
    %21 = arith.maximumf %19, %20 : vector<128x128xf32>
    %c0_18 = arith.constant 0 : index
    %c0_19 = arith.constant 0 : index
    %22 = vector.load %arg8[%c0_18, %c0_19] : memref<1x128xf32, #tpu.memory_space<vmem>>, vector<1x128xf32>
    %cst_20 = arith.constant dense<0.000000e+00> : vector<1x128xf32>
    %23 = tpu.matmul %22, %21, %cst_20 {dimension_numbers = #tpu.dot_dimension_numbers<[1], [0], [0], [1], [0, 0, 1, 1], [], []>, precision = #tpu.contract_precision<fp32>} : vector<1x128xf32>, vector<128x128xf32>, vector<1x128xf32> -> vector<1x128xf32>
    %c0_21 = arith.constant 0 : index
    %c0_22 = arith.constant 0 : index
    %24 = vector.load %arg9[%c0_21, %c0_22] : memref<1x1xf32, #tpu.memory_space<vmem>>, vector<1x1xf32>
    %25 = vector.broadcast %24 : vector<1x1xf32> to vector<1x128xf32>
    %26 = arith.addf %23, %25 : vector<1x128xf32>
    %27 = math.tanh %26 : vector<1x128xf32>
    %c0_23 = arith.constant 0 : index
    %c0_24 = arith.constant 0 : index
    %28 = vector.load %arg10[%c0_23, %c0_24] : memref<1x128xf32, #tpu.memory_space<vmem>>, vector<1x128xf32>
    tpu.vector_store %arg10[%c0_23, %c0_24], %27 {strides = array<i32>} : memref<1x128xf32, #tpu.memory_space<vmem>>, vector<1x128xf32>,
    return
  }
  func.func @transform_0(%arg0: i32) -> (i32, i32) {
    %c0_i32 = arith.constant 0 : i32
    %c0_i32_0 = arith.constant 0 : i32
    return %c0_i32, %arg0 : i32, i32
  }
  func.func @transform_1(%arg0: i32) -> (i32, i32) {
    %c0_i32 = arith.constant 0 : i32
    %c0_i32_0 = arith.constant 0 : i32
    %c0_i32_1 = arith.constant 0 : i32
    return %c0_i32, %c0_i32_0 : i32, i32
  }
  func.func @transform_2(%arg0: i32) -> (i32, i32) {
    %c0_i32 = arith.constant 0 : i32
    %c0_i32_0 = arith.constant 0 : i32
    %c0_i32_1 = arith.constant 0 : i32
    return %c0_i32, %c0_i32_0 : i32, i32
  }
  func.func @transform_3(%arg0: i32) -> (i32, i32) {
    %c0_i32 = arith.constant 0 : i32
    %c0_i32_0 = arith.constant 0 : i32
    %c0_i32_1 = arith.constant 0 : i32
    return %c0_i32, %c0_i32_0 : i32, i32
  }
  func.func @transform_4(%arg0: i32) -> (i32, i32) {
    %c0_i32 = arith.constant 0 : i32
    %c0_i32_0 = arith.constant 0 : i32
    %c0_i32_1 = arith.constant 0 : i32
    return %c0_i32, %c0_i32_0 : i32, i32
  }
  func.func @transform_5(%arg0: i32) -> (i32, i32) {
    %c0_i32 = arith.constant 0 : i32
    %c0_i32_0 = arith.constant 0 : i32
    %c0_i32_1 = arith.constant 0 : i32
    return %c0_i32, %c0_i32_0 : i32, i32
  }
  func.func @transform_6(%arg0: i32) -> (i32, i32) {
    %c0_i32 = arith.constant 0 : i32
    %c0_i32_0 = arith.constant 0 : i32
    %c0_i32_1 = arith.constant 0 : i32
    return %c0_i32, %c0_i32_0 : i32, i32
  }
  func.func @transform_7(%arg0: i32) -> (i32, i32) {
    %c0_i32 = arith.constant 0 : i32
    %c0_i32_0 = arith.constant 0 : i32
    %c0_i32_1 = arith.constant 0 : i32
    return %c0_i32, %c0_i32_0 : i32, i32
  }
  func.func @transform_8(%arg0: i32) -> (i32, i32) {
    %c0_i32 = arith.constant 0 : i32
    %c0_i32_0 = arith.constant 0 : i32
    %c0_i32_1 = arith.constant 0 : i32
    return %c0_i32, %c0_i32_0 : i32, i32
  }
  func.func @transform_9(%arg0: i32) -> (i32, i32) {
    %c0_i32 = arith.constant 0 : i32
    %c0_i32_0 = arith.constant 0 : i32
    return %c0_i32, %arg0 : i32, i32
  }
}

</mosaic_0001>

<bundles_post_ra>
// kernel: tpu_custom_call.1
= control target key start
LH: loop header
LB: loop body
LE: loop exit
PB: predicated region body
PF: predicated region fallthrough
CT: control target
= control target key end

     0   :  { %s2911_s0 = inlined_call_operand.vmem [shape: f32[42,128], index: 0, kind: input, shape index: {}]   ;;  %s2912_s1 = inlined_call_operand.vmem [shape: f32[80,42], index: 1, kind: input, shape index: {}]   ;;  %s2913_s2 = inlined_call_operand.vmem [shape: f32[80,1], index: 2, kind: input, shape index: {}]   ;;  %s2914_s3 = inlined_call_operand.vmem [shape: f32[96,80], index: 3, kind: input, shape index: {}]   ;;  %s2915_s4 = inlined_call_operand.vmem [shape: f32[96,1], index: 4, kind: input, shape index: {}]   ;;  %s2916_s5 = inlined_call_operand.vmem [shape: f32[128,96], index: 5, kind: input, shape index: {}]   ;;  %s2917_s6 = inlined_call_operand.vmem [shape: f32[128,1], index: 6, kind: input, shape index: {}]   ;;  %s2918_s7 = inlined_call_operand.vmem [shape: f32[1,128], index: 7, kind: input, shape index: {}]   ;;  %s2919_s8 = inlined_call_operand.<no memory space> [shape: f32[1,1], index: 8, kind: input, shape index: {}]   ;;  %s2920_s9 = inlined_call_operand.hbm [shape: f32[1,128], index: 9, kind: output, shape index: {}]  }
   0x1   :  { %v14_v0 = vstv %s2919_s8 }
   0x2   :  { %15 = vst [vmem:[#allocation2] sm:$0x1] %v14_v0 }
   0x3   :  { %v35_v1 = vld [vmem:[%s2911_s0] sm:$0xff]  ;;  %v36_v2 = vld [vmem:[%s2911_s0 + $0x8] sm:$0xff]  ;;  %v37_v3 = vld [vmem:[%s2911_s0 + $0x10] sm:$0xff]  ;;  %vm111_vm0 = vcmask 343040   ;;  %v2295_v10 = vmov 0   ;;  %vm142_vm1 = vcmask 1041408  }
   0x4   :  { %v2049_v4 = vpack.c.bf16 %v36_v2, %v35_v1  ;;  %v38_v5 = vld [vmem:[%s2911_s0 + $0x18] sm:$0xff]  ;;  %v39_v7 = vld [vmem:[%s2911_s0 + $0x20] sm:$0xff]  ;;  %v40_v8 = vld [vmem:[%s2911_s0 + $0x28] sm:$0x3]  ;;  %2267 = vset.pattern.permute.xlu0 %v2295_v10  ;;  %2268 = vset.pattern.permute.xlu1 %v2295_v10  ;;  %vm2296_vm2 = vmmov 1  }
   0x5   :  { %v2053_v6 = vpack.c.bf16 %v38_v5, %v37_v3  ;;  %v41_v9 = vld [vmem:[%s2912_s1] sm:$0xff]  ;;  %v2057_v12 = vpack.c.bf16 %v40_v8, %v39_v7  ;;  %v52_v13 = vld [vmem:[%s2913_s2 + $0x8] sm:$0xff]  ;;  %v53_v14 = vld [vmem:[%s2913_s2 + $0x10] sm:$0xff] }
   0x6   :  { %2050 = vmatprep.subr.bf16.mxu0 %v2049_v4  ;;  %1738 = vmatprep.mubr.msk.f32.mxu0 %vm111_vm0, %v41_v9  ;;  %v51_v11 = vld [vmem:[%s2913_s2] sm:$0xff]  ;;  %vm2058_vm3 = vmpackc.low %vm142_vm1, %vm2296_vm2  ;;  %v54_v15 = vld [vmem:[%s2913_s2 + $0x18] sm:$0xff] }
   0x7   :  { %2052 = vmatpush3.bf16.msra.mxu0 %v2049_v4  ;;  %63 = vperm.xlu0 %2267, %v51_v11   ;;  %v55_v16 = vld [vmem:[%s2913_s2 + $0x20] sm:$0xff]  ;;  %v56_v17 = vld [vmem:[%s2913_s2 + $0x28] sm:$0xff]  ;;  %v43_v19 = vld [vmem:[%s2912_s1 + $0x10] sm:$0xff] }
   0x8   :  { %2054 = vmatprep.subr.bf16.mxu0 %v2053_v6  ;;  %73 = vperm.xlu1 %2268, %v53_v14   ;;  %v42_v18 = vld [vmem:[%s2912_s1 + $0x8] sm:$0xff]  ;;  %v57_v20 = vld [vmem:[%s2913_s2 + $0x30] sm:$0xff]  ;;  %v58_v21 = vld [vmem:[%s2913_s2 + $0x38] sm:$0xff] }
   0x9   :  { %v44_v22 = vld [vmem:[%s2912_s1 + $0x18] sm:$0xff]  ;;  %v45_v23 = vld [vmem:[%s2912_s1 + $0x20] sm:$0xff] }
   0xa   :  { %v59_v24 = vld [vmem:[%s2913_s2 + $0x40] sm:$0xff] }
   0xb   :  { %2056 = vmatpush3.bf16.msra.mxu0 %v2053_v6  ;;  %68 = vperm.xlu0 %2267, %v52_v13  }
   0xc   :  { %2059 = vmatprep.subr.msk.bf16.mxu0 %vm2058_vm3, %v2057_v12  ;;  %78 = vperm.xlu1 %2268, %v54_v15  }
   0xf   :  { %2062 = vmatpush3.bf16.msk.msra.mxu0 %vm2058_vm3, %v2057_v12  ;;  %83 = vperm.xlu0 %2267, %v55_v16  }
  0x10   :  { %88 = vperm.xlu1 %2268, %v56_v17  }
  0x12   :  { %1739 = vmatmul.mubr.msk.f32.vlgmr.msra.gmra.mrb[0].mxu0 %vm111_vm0, %v42_v18 }
  0x13   :  { %1741 = vmatprep.mubr.msk.f32.mxu0 %vm111_vm0, %v43_v19  ;;  %93 = vperm.xlu0 %2267, %v57_v20  }
  0x14   :  { %98 = vperm.xlu1 %2268, %v58_v21  }
  0x15   :  { %16 = vsyncpa [#allocation4], 0  ;;  %v60_v25 = vld [vmem:[%s2913_s2 + $0x48] sm:$0xff]  ;;  %v47_v27 = vld [vmem:[%s2912_s1 + $0x30] sm:$0xff]  ;;  %vm355_vm4 = vcmask 654336   ;;  %vm641_vm5 = vcmask 785408  }
  0x16   :  { %1742 = vmatmul.mubr.msk.f32.gmra.mrb[2].mxu0 %vm111_vm0, %v44_v22  ;;  %v46_v26 = vld [vmem:[%s2912_s1 + $0x28] sm:$0xff]  ;;  %v283_v28 = vld [vmem:[%s2915_s4] sm:$0xff]  ;;  %v48_v30 = vld [vmem:[%s2912_s1 + $0x38] sm:$0xff]  ;;  %vm2298_vm6 = vmmov 0  }
  0x17   :  { %1744 = vmatprep.mubr.msk.f32.mxu0 %vm111_vm0, %v45_v23  ;;  %103 = vperm.xlu0 %2267, %v59_v24   ;;  %v284_v29 = vld [vmem:[%s2915_s4 + $0x8] sm:$0xff]  ;;  %v49_v31 = vld [vmem:[%s2912_s1 + $0x40] sm:$0xff]  ;;  %v285_v32 = vld [vmem:[%s2915_s4 + $0x10] sm:$0xff] }
  0x18   :  { %108 = vperm.xlu1 %2268, %v60_v25   ;;  %v286_v33 = vld [vmem:[%s2915_s4 + $0x18] sm:$0xff]  ;;  %v50_v34 = vld [vmem:[%s2912_s1 + $0x48] sm:$0xff]  ;;  %v287_v35 = vld [vmem:[%s2915_s4 + $0x20] sm:$0xff] }
  0x19   :  { %v288_v36 = vld [vmem:[%s2915_s4 + $0x28] sm:$0xff]  ;;  %v289_v37 = vld [vmem:[%s2915_s4 + $0x30] sm:$0xff]  ;;  %v290_v38 = vld [vmem:[%s2915_s4 + $0x38] sm:$0xff] }
  0x1a   :  { %1745 = vmatmul.mubr.msk.f32.gmra.mrb[4].mxu0 %vm111_vm0, %v46_v26  ;;  %v291_v39 = vld [vmem:[%s2915_s4 + $0x40] sm:$0xff]  ;;  %v292_v40 = vld [vmem:[%s2915_s4 + $0x48] sm:$0xff]  ;;  %v293_v41 = vld [vmem:[%s2915_s4 + $0x50] sm:$0xff] }
  0x1b   :  { %1747 = vmatprep.mubr.msk.f32.mxu0 %vm111_vm0, %v47_v27  ;;  %297 = vperm.xlu0 %2267, %v283_v28   ;;  %v294_v42 = vld [vmem:[%s2915_s4 + $0x58] sm:$0xff]  ;;  %v545_v43 = vld [vmem:[%s2917_s6] sm:$0xff]  ;;  %v546_v44 = vld [vmem:[%s2917_s6 + $0x8] sm:$0xff] }
  0x1c   :  { %302 = vperm.xlu1 %2268, %v284_v29   ;;  %v547_v45 = vld [vmem:[%s2917_s6 + $0x10] sm:$0xff]  ;;  %v548_v46 = vld [vmem:[%s2917_s6 + $0x18] sm:$0xff]  ;;  %v549_v47 = vld [vmem:[%s2917_s6 + $0x20] sm:$0xff] }
  0x1d   :  { %v550_v48 = vld [vmem:[%s2917_s6 + $0x28] sm:$0xff]  ;;  %v551_v49 = vld [vmem:[%s2917_s6 + $0x30] sm:$0xff]  ;;  %v552_v50 = vld [vmem:[%s2917_s6 + $0x38] sm:$0xff] }
  0x1e   :  { %1748 = vmatmul.mubr.msk.f32.gmra.mrb[6].mxu0 %vm111_vm0, %v48_v30  ;;  %v553_v51 = vld [vmem:[%s2917_s6 + $0x40] sm:$0xff]  ;;  %v554_v52 = vld [vmem:[%s2917_s6 + $0x48] sm:$0xff]  ;;  %v555_v53 = vld [vmem:[%s2917_s6 + $0x50] sm:$0xff] }
  0x1f   :  { %1750 = vmatprep.mubr.msk.f32.mxu0 %vm111_vm0, %v49_v31  ;;  %307 = vperm.xlu0 %2267, %v285_v32   ;;  %v556_v54 = vld [vmem:[%s2917_s6 + $0x58] sm:$0xff]  ;;  %v557_v55 = vld [vmem:[%s2917_s6 + $0x60] sm:$0xff]  ;;  %v558_v56 = vld [vmem:[%s2917_s6 + $0x68] sm:$0xff] }
  0x20   :  { %312 = vperm.xlu1 %2268, %v286_v33   ;;  %v559_v57 = vld [vmem:[%s2917_s6 + $0x70] sm:$0xff]  ;;  %v560_v58 = vld [vmem:[%s2917_s6 + $0x78] sm:$0xff]  ;;  %v852_v59 = vld [vmem:[#allocation2] sm:$0x1] }
  0x21   :  { %v271_v60 = vld [vmem:[%s2914_s3] sm:$0xff] }
  0x22   :  { %1751 = vmatmul.mubr.msk.f32.gmra.mrb[8].mxu0 %vm111_vm0, %v50_v34 }
  0x23   :  { %317 = vperm.xlu0 %2267, %v287_v35   ;;  %1773 = vmatprep.mubr.msk.f32.mxu0 %vm355_vm4, %v271_v60 }
  0x24   :  { %322 = vperm.xlu1 %2268, %v288_v36  }
  0x27   :  { %327 = vperm.xlu0 %2267, %v289_v37  }
  0x28   :  { %332 = vperm.xlu1 %2268, %v290_v38  }
  0x2b   :  { %337 = vperm.xlu0 %2267, %v291_v39  }
  0x2c   :  { %342 = vperm.xlu1 %2268, %v292_v40  }
  0x2f   :  { %347 = vperm.xlu0 %2267, %v293_v41  }
  0x30   :  { %352 = vperm.xlu1 %2268, %v294_v42   ;;  %v272_v42 = vld [vmem:[%s2914_s3 + $0x8] sm:$0xff] }
  0x33   :  { %563 = vperm.xlu0 %2267, %v545_v43   ;;  %v273_v43 = vld [vmem:[%s2914_s3 + $0x10] sm:$0xff] }
  0x34   :  { %568 = vperm.xlu1 %2268, %v546_v44   ;;  %v274_v44 = vld [vmem:[%s2914_s3 + $0x18] sm:$0xff] }
  0x37   :  { %573 = vperm.xlu0 %2267, %v547_v45   ;;  %v275_v45 = vld [vmem:[%s2914_s3 + $0x20] sm:$0xff] }
  0x38   :  { %578 = vperm.xlu1 %2268, %v548_v46   ;;  %v276_v46 = vld [vmem:[%s2914_s3 + $0x28] sm:$0xff] }
  0x3b   :  { %583 = vperm.xlu0 %2267, %v549_v47   ;;  %v277_v47 = vld [vmem:[%s2914_s3 + $0x30] sm:$0xff] }
  0x3c   :  { %588 = vperm.xlu1 %2268, %v550_v48   ;;  %v278_v48 = vld [vmem:[%s2914_s3 + $0x38] sm:$0xff] }
  0x3f   :  { %593 = vperm.xlu0 %2267, %v551_v49   ;;  %v279_v49 = vld [vmem:[%s2914_s3 + $0x40] sm:$0xff] }
  0x40   :  { %598 = vperm.xlu1 %2268, %v552_v50   ;;  %v280_v50 = vld [vmem:[%s2914_s3 + $0x48] sm:$0xff] }
  0x43   :  { %603 = vperm.xlu0 %2267, %v553_v51   ;;  %v281_v51 = vld [vmem:[%s2914_s3 + $0x50] sm:$0xff] }
  0x44   :  { %608 = vperm.xlu1 %2268, %v554_v52   ;;  %v282_v52 = vld [vmem:[%s2914_s3 + $0x58] sm:$0xff] }
  0x47   :  { %613 = vperm.xlu0 %2267, %v555_v53   ;;  %v529_v53 = vld [vmem:[%s2916_s5] sm:$0xff] }
  0x48   :  { %618 = vperm.xlu1 %2268, %v556_v54  }
  0x4b   :  { %623 = vperm.xlu0 %2267, %v557_v55  }
  0x4c   :  { %628 = vperm.xlu1 %2268, %v558_v56  }
  0x4f   :  { %633 = vperm.xlu0 %2267, %v559_v57  }
  0x50   :  { %638 = vperm.xlu1 %2268, %v560_v58  }
  0x53   :  { %855 = vperm.xlu0 %2267, %v852_v59  }
  0x86   :  { %v64_v62 = vpop.permute.xlu0 %63 }
  0x87   :  { %v74_v61 = vpop.permute.xlu1 %73 }
  0x8a   :  { %v69_v0 = vpop.permute.xlu0 %68 }
  0x8b   :  { %v79_v63 = vpop.permute.xlu1 %78 }
  0x8e   :  { %v84_v9 = vpop.permute.xlu0 %83 }
  0x8f   :  { %v89_v6 = vpop.permute.xlu1 %88 }
  0x92   :  { %v94_v22 = vpop.permute.xlu0 %93 }
  0x93   :  { %v99_v19 = vpop.permute.xlu1 %98 }
  0x96   :  { %v104_v34 = vpop.permute.xlu0 %103 }
  0x97   :  { %v109_v31 = vpop.permute.xlu1 %108 }
  0x9a   :  { %v298_v55 = vpop.permute.xlu0 %297 }
  0x9b   :  { %v303_v54 = vpop.permute.xlu1 %302 }
  0x9e   :  { %v308_v57 = vpop.permute.xlu0 %307 }
  0x9f   :  { %v313_v56 = vpop.permute.xlu1 %312 }
  0xe5   :  { %v1740_v1 = vpop.f32.mrb[0].mxu0 }
  0xe6   :  { %v218_v2 = vadd.f32 %v1740_v1, %v69_v0  ;;  %v212_v3 = vpop.f32.mrb[1].mxu0 }
  0xe7   :  { %v213_v4 = vadd.f32 %v212_v3, %v64_v62 }
  0xe8   :  { %v262_v5 = vmax.f32 %v218_v2, 0.0 }
  0xe9   :  { %v261_v7 = vmax.f32 %v213_v4, 0.0  ;;  %v1743_v8 = vpop.f32.mrb[2].mxu0 }
  0xea   :  { %v228_v10 = vadd.f32 %v1743_v8, %v79_v63  ;;  %v222_v11 = vpop.f32.mrb[3].mxu0  ;;  %v318_v63 = vpop.permute.xlu0 %317 }
  0xeb   :  { %v2063_v12 = vpack.c.bf16 %v262_v5, %v261_v7  ;;  %v223_v13 = vadd.f32 %v222_v11, %v74_v61  ;;  %v323_v61 = vpop.permute.xlu1 %322 }
  0xec   :  { %v264_v14 = vmax.f32 %v228_v10, 0.0 }
  0xed   :  { %v263_v15 = vmax.f32 %v223_v13, 0.0  ;;  %v1746_v16 = vpop.f32.mrb[4].mxu0  ;;  %2064 = vmatprep.subr.bf16.mxu0 %v2063_v12 }
  0xee   :  { %v238_v17 = vadd.f32 %v1746_v16, %v89_v6  ;;  %v232_v18 = vpop.f32.mrb[5].mxu0  ;;  %2066 = vmatpush3.bf16.msra.mxu0 %v2063_v12  ;;  %v328_v11 = vpop.permute.xlu0 %327 }
  0xef   :  { %v2067_v20 = vpack.c.bf16 %v264_v14, %v263_v15  ;;  %v233_v21 = vadd.f32 %v232_v18, %v84_v9  ;;  %v333_v8 = vpop.permute.xlu1 %332 }
  0xf0   :  { %v266_v23 = vmax.f32 %v238_v17, 0.0 }
  0xf1   :  { %v265_v24 = vmax.f32 %v233_v21, 0.0  ;;  %v1749_v25 = vpop.f32.mrb[6].mxu0  ;;  %2068 = vmatprep.subr.bf16.mxu0 %v2067_v20 }
  0xf2   :  { %v248_v26 = vadd.f32 %v1749_v25, %v99_v19  ;;  %v242_v27 = vpop.f32.mrb[7].mxu0  ;;  %2070 = vmatpush3.bf16.msra.mxu0 %v2067_v20 }
  0xf3   :  { %v2071_v28 = vpack.c.bf16 %v266_v23, %v265_v24  ;;  %v243_v29 = vadd.f32 %v242_v27, %v94_v22  ;;  %v343_v21 = vpop.permute.xlu1 %342  ;;  %v338_v24 = vpop.permute.xlu0 %337 }
  0xf4   :  { %v268_v30 = vmax.f32 %v248_v26, 0.0 }
  0xf5   :  { %v267_v32 = vmax.f32 %v243_v29, 0.0  ;;  %v1752_v33 = vpop.f32.mrb[8].mxu0  ;;  %2072 = vmatprep.subr.bf16.mxu0 %v2071_v28 }
  0xf6   :  { %v258_v35 = vadd.f32 %v1752_v33, %v109_v31  ;;  %v252_v36 = vpop.f32.mrb[9].mxu0  ;;  %2074 = vmatpush3.bf16.msra.mxu0 %v2071_v28 }
  0xf7   :  { %v2075_v37 = vpack.c.bf16 %v268_v30, %v267_v32  ;;  %v253_v38 = vadd.f32 %v252_v36, %v104_v34  ;;  %v353_v33 = vpop.permute.xlu1 %352  ;;  %v348_v36 = vpop.permute.xlu0 %347 }
  0xf8   :  { %v270_v39 = vmax.f32 %v258_v35, 0.0 }
  0xf9   :  { %v269_v40 = vmax.f32 %v253_v38, 0.0  ;;  %2076 = vmatprep.subr.bf16.mxu0 %v2075_v37 }
  0xfa   :  { %2078 = vmatpush3.bf16.msra.mxu0 %v2075_v37 }
  0xfb   :  { %v2079_v41 = vpack.c.bf16 %v270_v39, %v269_v40 }
  0xfd   :  { %2080 = vmatprep.subr.bf16.mxu0 %v2079_v41 }
  0xfe   :  { %2082 = vmatpush3.bf16.msra.mxu0 %v2079_v41 }
 0x101   :  { %1774 = vmatmul.mubr.msk.f32.vlgmr.msra.gmra.mrb[10].mxu0 %vm355_vm4, %v272_v42 }
 0x102   :  { %1776 = vmatprep.mubr.msk.f32.mxu0 %vm355_vm4, %v273_v43 }
 0x105   :  { %1777 = vmatmul.mubr.msk.f32.gmra.mrb[12].mxu0 %vm355_vm4, %v274_v44  ;;  %v530_v44 = vld [vmem:[%s2916_s5 + $0x8] sm:$0xff] }
 0x106   :  { %1779 = vmatprep.mubr.msk.f32.mxu0 %vm355_vm4, %v275_v45  ;;  %v531_v45 = vld [vmem:[%s2916_s5 + $0x10] sm:$0xff] }
 0x109   :  { %1780 = vmatmul.mubr.msk.f32.gmra.mrb[14].mxu0 %vm355_vm4, %v276_v46  ;;  %v532_v46 = vld [vmem:[%s2916_s5 + $0x18] sm:$0xff] }
 0x10a   :  { %1782 = vmatprep.mubr.msk.f32.mxu0 %vm355_vm4, %v277_v47  ;;  %v533_v47 = vld [vmem:[%s2916_s5 + $0x20] sm:$0xff] }
 0x10d   :  { %1783 = vmatmul.mubr.msk.f32.gmra.mrb[16].mxu0 %vm355_vm4, %v278_v48  ;;  %v534_v48 = vld [vmem:[%s2916_s5 + $0x28] sm:$0xff] }
 0x10e   :  { %1785 = vmatprep.mubr.msk.f32.mxu0 %vm355_vm4, %v279_v49  ;;  %v535_v49 = vld [vmem:[%s2916_s5 + $0x30] sm:$0xff] }
 0x111   :  { %1786 = vmatmul.mubr.msk.f32.gmra.mrb[18].mxu0 %vm355_vm4, %v280_v50  ;;  %v536_v50 = vld [vmem:[%s2916_s5 + $0x38] sm:$0xff] }
 0x112   :  { %1788 = vmatprep.mubr.msk.f32.mxu0 %vm355_vm4, %v281_v51  ;;  %v537_v51 = vld [vmem:[%s2916_s5 + $0x40] sm:$0xff] }
 0x115   :  { %1789 = vmatmul.mubr.msk.f32.gmra.mrb[20].mxu0 %vm355_vm4, %v282_v52  ;;  %v538_v52 = vld [vmem:[%s2916_s5 + $0x48] sm:$0xff] }
 0x116   :  { %1815 = vmatprep.mubr.msk.f32.mxu0 %vm641_vm5, %v529_v53  ;;  %v539_v53 = vld [vmem:[%s2916_s5 + $0x50] sm:$0xff] }
 0x1d4   :  { %v1775_v58 = vpop.f32.mrb[10].mxu0 }
 0x1d5   :  { %v464_v59 = vadd.f32 %v1775_v58, %v303_v54  ;;  %v458_v60 = vpop.f32.mrb[11].mxu0  ;;  %v540_v54 = vld [vmem:[%s2916_s5 + $0x58] sm:$0xff] }
 0x1d6   :  { %v459_v62 = vadd.f32 %v458_v60, %v298_v55  ;;  %v541_v55 = vld [vmem:[%s2916_s5 + $0x60] sm:$0xff]  ;;  %v544_v58 = vld [vmem:[%s2916_s5 + $0x78] sm:$0xff]  ;;  %v2922_v60 = vmov 0.0  }
 0x1d7   :  { %v518_v0 = vmax.f32 %v464_v59, 0.0  ;;  %v2297_v59 = vmov 0.0|0.0   ;;  %1941 = vmatprep.mubr.msk.f32.mxu1 %vm2298_vm6, %v2922_v60 }
 0x1d8   :  { %v517_v1 = vmax.f32 %v459_v62, 0.0  ;;  %v1778_v2 = vpop.f32.mrb[12].mxu0  ;;  %2155 = vmatprep.subr.bf16.mxu1 %v2297_v59  ;;  %v564_v62 = vpop.permute.xlu0 %563 }
 0x1d9   :  { %v474_v3 = vadd.f32 %v1778_v2, %v313_v56  ;;  %v468_v4 = vpop.f32.mrb[13].mxu0  ;;  %v542_v56 = vld [vmem:[%s2916_s5 + $0x68] sm:$0xff] }
 0x1da   :  { %v2083_v5 = vpack.c.bf16 %v518_v0, %v517_v1  ;;  %v469_v6 = vadd.f32 %v468_v4, %v308_v57  ;;  %v543_v57 = vld [vmem:[%s2916_s5 + $0x70] sm:$0xff]  ;;  %v851_v0 = vld [vmem:[%s2918_s7] sm:$0x1]  ;;  %s2300_s7 = smov [#allocation3]  }
 0x1db   :  { %v520_v7 = vmax.f32 %v474_v3, 0.0  ;;  %v2647_v2 = vand.u32 4294901760, %v851_v0  ;;  %s1511_s21 = sshll.u32 %s2300_s7, 4  ;;  %s1512_s21 = int_to_ptr.vmem [resolvable:$true] %s1511_s21 }
 0x1dc   :  { %v519_v9 = vmax.f32 %v469_v6, 0.0  ;;  %v1781_v10 = vpop.f32.mrb[14].mxu0  ;;  %2084 = vmatprep.subr.bf16.mxu0 %v2083_v5  ;;  %v574_v1 = vpop.permute.xlu0 %573  ;;  %s2271_s6 = scalar_lea.vmem %s1512_s21, 16  ;;  %s2275_s4 = scalar_lea.vmem %s1512_s21, 32 }
 0x1dd   :  { %v484_v12 = vadd.f32 %v1781_v10, %v323_v61  ;;  %v478_v13 = vpop.f32.mrb[15].mxu0  ;;  %2086 = vmatpush3.bf16.msra.mxu0 %v2083_v5  ;;  %v569_v61 = vpop.permute.xlu1 %568  ;;  %v2650_v5 = vsub.f32 %v851_v0, %v2647_v2  ;;  %p2272_p0 = scmp.ne.s32.totalorder %s1512_s21, %s2271_s6  ;;  %p2276_p1 = scmp.lt.s32.totalorder %s1512_s21, %s1512_s21 }
 0x1de   :  { %v2087_v14 = vpack.c.bf16 %v520_v7, %v519_v9  ;;  %v479_v15 = vadd.f32 %v478_v13, %v318_v63  ;;  %p2277_p2 = scmp.lt.s32.totalorder %s2275_s4, %s2271_s6 }
 0x1df   :  { %v522_v16 = vmax.f32 %v484_v12, 0.0 }
 0x1e0   :  { %v521_v17 = vmax.f32 %v479_v15, 0.0  ;;  %v1784_v18 = vpop.f32.mrb[16].mxu0  ;;  %2088 = vmatprep.subr.bf16.mxu0 %v2087_v14  ;;  %v584_v4 = vpop.permute.xlu0 %583  ;;  %p2278_p3 = por %p2277_p2, %p2276_p1 }
 0x1e1   :  { %v494_v19 = vadd.f32 %v1784_v18, %v333_v8  ;;  %v488_v20 = vpop.f32.mrb[17].mxu0  ;;  %2090 = vmatpush3.bf16.msra.mxu0 %v2087_v14  ;;  %v579_v63 = vpop.permute.xlu1 %578 }
 0x1e2   :  { %v2091_v22 = vpack.c.bf16 %v522_v16, %v521_v17  ;;  %v489_v23 = vadd.f32 %v488_v20, %v328_v11  ;;  %v2921_v11 = vand.u32 4294901760, %v2650_v5  ;;  %p2279_p4 = pnand %p2278_p3, %p2272_p0 }
 0x1e3   :  { %v524_v25 = vmax.f32 %v494_v19, 0.0 }
 0x1e4   :  { %v523_v26 = vmax.f32 %v489_v23, 0.0  ;;  %v1787_v27 = vpop.f32.mrb[18].mxu0  ;;  %2092 = vmatprep.subr.bf16.mxu0 %v2091_v22  ;;  %v594_v15 = vpop.permute.xlu0 %593  ;;  %v2658_v23 = vsub.f32 %v2650_v5, %v2921_v11 }
 0x1e5   :  { %v504_v28 = vadd.f32 %v1787_v27, %v343_v21  ;;  %v498_v29 = vpop.f32.mrb[19].mxu0  ;;  %2094 = vmatpush3.bf16.msra.mxu0 %v2091_v22  ;;  %v589_v3 = vpop.permute.xlu1 %588 }
 0x1e6   :  { %v2095_v30 = vpack.c.bf16 %v524_v25, %v523_v26  ;;  %v499_v31 = vadd.f32 %v498_v29, %v338_v24 }
 0x1e7   :  { %v526_v32 = vmax.f32 %v504_v28, 0.0 }
 0x1e8   :  { %v525_v34 = vmax.f32 %v499_v31, 0.0  ;;  %v1790_v35 = vpop.f32.mrb[20].mxu0  ;;  %2096 = vmatprep.subr.bf16.mxu0 %v2095_v30 }
 0x1e9   :  { %v514_v37 = vadd.f32 %v1790_v35, %v353_v33  ;;  %v508_v38 = vpop.f32.mrb[21].mxu0  ;;  %2098 = vmatpush3.bf16.msra.mxu0 %v2095_v30  ;;  %v599_v12 = vpop.permute.xlu1 %598 }
 0x1ea   :  { %v2099_v39 = vpack.c.bf16 %v526_v32, %v525_v34  ;;  %v509_v40 = vadd.f32 %v508_v38, %v348_v36 }
 0x1eb   :  { %v528_v41 = vmax.f32 %v514_v37, 0.0  ;;  %v604_v37 = vpop.permute.xlu0 %603 }
 0x1ec   :  { %v527_v42 = vmax.f32 %v509_v40, 0.0  ;;  %2100 = vmatprep.subr.bf16.mxu0 %v2099_v39 }
 0x1ed   :  { %2102 = vmatpush3.bf16.msra.mxu0 %v2099_v39  ;;  %v609_v32 = vpop.permute.xlu1 %608 }
 0x1ee   :  { %v2103_v43 = vpack.c.bf16 %v528_v41, %v527_v42 }
 0x1f0   :  { %2104 = vmatprep.subr.bf16.mxu0 %v2103_v43 }
 0x1f1   :  { %2106 = vmatpush3.bf16.msra.mxu0 %v2103_v43 }
 0x1f2   :  { %2107 = vmatprep.subr.bf16.mxu0 %v2297_v59 }
 0x1f4   :  { %1816 = vmatmul.mubr.msk.f32.vlgmr.msra.gmra.mrb[22].mxu0 %vm641_vm5, %v530_v44 }
 0x1f5   :  { %1818 = vmatprep.mubr.msk.f32.mxu0 %vm641_vm5, %v531_v45 }
 0x1f8   :  { %1819 = vmatmul.mubr.msk.f32.gmra.mrb[24].mxu0 %vm641_vm5, %v532_v46 }
 0x1f9   :  { %1821 = vmatprep.mubr.msk.f32.mxu0 %vm641_vm5, %v533_v47 }
 0x1fc   :  { %1822 = vmatmul.mubr.msk.f32.gmra.mrb[26].mxu0 %vm641_vm5, %v534_v48 }
 0x1fd   :  { %1824 = vmatprep.mubr.msk.f32.mxu0 %vm641_vm5, %v535_v49 }
 0x200   :  { %1825 = vmatmul.mubr.msk.f32.gmra.mrb[28].mxu0 %vm641_vm5, %v536_v50 }
 0x201   :  { %1827 = vmatprep.mubr.msk.f32.mxu0 %vm641_vm5, %v537_v51 }
 0x204   :  { %1828 = vmatmul.mubr.msk.f32.gmra.mrb[30].mxu0 %vm641_vm5, %v538_v52 }
 0x205   :  { %1830 = vmatprep.mubr.msk.f32.mxu0 %vm641_vm5, %v539_v53 }
 0x208   :  { %1831 = vmatmul.mubr.msk.f32.gmra.mrb[32].mxu0 %vm641_vm5, %v540_v54 }
 0x209   :  { %1833 = vmatprep.mubr.msk.f32.mxu0 %vm641_vm5, %v541_v55 }
 0x20c   :  { %1834 = vmatmul.mubr.msk.f32.gmra.mrb[34].mxu0 %vm641_vm5, %v542_v56 }
 0x20d   :  { %1836 = vmatprep.mubr.msk.f32.mxu0 %vm641_vm5, %v543_v57 }
 0x210   :  { %1837 = vmatmul.mubr.msk.f32.gmra.mrb[36].mxu0 %vm641_vm5, %v544_v58 }
 0x211   :  { %1871 = vmatprep.mubr.msk.f32.mxu0 %vm2298_vm6, %v2922_v60 }
 0x2c7   :  { %v1817_v6 = vpop.f32.mrb[22].mxu0 }
 0x2c8   :  { %v762_v7 = vadd.f32 %v1817_v6, %v569_v61  ;;  %v756_v8 = vpop.f32.mrb[23].mxu0  ;;  %v614_v6 = vpop.permute.xlu0 %613 }
 0x2c9   :  { %v757_v9 = vadd.f32 %v756_v8, %v564_v62  ;;  %v619_v62 = vpop.permute.xlu1 %618 }
 0x2ca   :  { %v836_v10 = vmax.f32 %v762_v7, 0.0 }
 0x2cb   :  { %v835_v13 = vmax.f32 %v757_v9, 0.0  ;;  %v1820_v14 = vpop.f32.mrb[24].mxu0 }
 0x2cc   :  { %v866_v16 = vand.u32 4294901760, %v836_v10  ;;  %v772_v17 = vadd.f32 %v1820_v14, %v579_v63  ;;  %v766_v18 = vpop.f32.mrb[25].mxu0 }
 0x2cd   :  { %v863_v19 = vand.u32 4294901760, %v835_v13  ;;  %v767_v20 = vadd.f32 %v766_v18, %v574_v1 }
 0x2ce   :  { %v2653_v21 = vsub.f32 %v836_v10, %v866_v16  ;;  %v838_v22 = vmax.f32 %v772_v17, 0.0 }
 0x2cf   :  { %v2660_v24 = vpack.c.bf16 %v866_v16, %v863_v19  ;;  %v2662_v25 = vsub.f32 %v835_v13, %v863_v19  ;;  %v837_v26 = vmax.f32 %v767_v20, 0.0  ;;  %v1823_v27 = vpop.f32.mrb[26].mxu0 }
 0x2d0   :  { %v963_v28 = vand.u32 4294901760, %v2653_v21  ;;  %v872_v29 = vand.u32 4294901760, %v838_v22  ;;  %v782_v30 = vadd.f32 %v1823_v27, %v589_v3  ;;  %v776_v31 = vpop.f32.mrb[27].mxu0 }
 0x2d1   :  { %v956_v33 = vand.u32 4294901760, %v2662_v25  ;;  %v869_v34 = vand.u32 4294901760, %v837_v26  ;;  %v777_v35 = vadd.f32 %v776_v31, %v584_v4  ;;  %2109 = vmatpush3.bf16.msra.mxu0 %v2660_v24  ;;  %v2156_v36 = vpack.c.bf16 %v2653_v21, %v2662_v25 }
 0x2d2   :  { %v2672_v38 = vsub.f32 %v2653_v21, %v963_v28  ;;  %v2674_v39 = vsub.f32 %v838_v22, %v872_v29  ;;  %v840_v40 = vmax.f32 %v782_v30, 0.0  ;;  %2110 = vmatprep.subr.bf16.mxu0 %v2297_v59 }
 0x2d3   :  { %v2681_v42 = vsub.f32 %v2662_v25, %v956_v33  ;;  %v2683_v43 = vpack.c.bf16 %v872_v29, %v869_v34  ;;  %v2685_v44 = vsub.f32 %v837_v26, %v869_v34  ;;  %v839_v45 = vmax.f32 %v777_v35, 0.0  ;;  %v1826_v46 = vpop.f32.mrb[28].mxu0  ;;  %2157 = vmatpush3.bf16.msra.mxu1 %v2156_v36 }
 0x2d4   :  { %v965_v47 = vand.u32 4294901760, %v2672_v38  ;;  %v977_v48 = vand.u32 4294901760, %v2674_v39  ;;  %v878_v49 = vand.u32 4294901760, %v840_v40  ;;  %v792_v50 = vadd.f32 %v1826_v46, %v599_v12  ;;  %v786_v51 = vpop.f32.mrb[29].mxu0  ;;  %2158 = vmatprep.subr.bf16.mxu1 %v2297_v59 }
 0x2d5   :  { %v958_v52 = vand.u32 4294901760, %v2681_v42  ;;  %v970_v53 = vand.u32 4294901760, %v2685_v44  ;;  %v875_v54 = vand.u32 4294901760, %v839_v45  ;;  %v787_v55 = vadd.f32 %v786_v51, %v594_v15  ;;  %2112 = vmatpush3.bf16.msra.mxu0 %v2683_v43 }
 0x2d6   :  { %v2696_v56 = vsub.f32 %v2674_v39, %v977_v48  ;;  %v2698_v57 = vsub.f32 %v840_v40, %v878_v49  ;;  %v842_v58 = vmax.f32 %v792_v50, 0.0  ;;  %v2159_v61 = vpack.c.bf16 %v2674_v39, %v2685_v44  ;;  %2113 = vmatprep.subr.bf16.mxu0 %v2297_v59  ;;  %v624_v50 = vpop.permute.xlu0 %623 }
 0x2d7   :  { %v2706_v63 = vsub.f32 %v2685_v44, %v970_v53  ;;  %v2708_v0 = vpack.c.bf16 %v878_v49, %v875_v54  ;;  %v2710_v1 = vsub.f32 %v839_v45, %v875_v54  ;;  %v841_v3 = vmax.f32 %v787_v55, 0.0  ;;  %v1829_v4 = vpop.f32.mrb[30].mxu0 }
 0x2d8   :  { %v979_v7 = vand.u32 4294901760, %v2696_v56  ;;  %v2927_v8 = vand.u32 4294901760, %v2698_v57  ;;  %v884_v9 = vand.u32 4294901760, %v842_v58  ;;  %v802_v10 = vadd.f32 %v1829_v4, %v609_v32  ;;  %2160 = vmatpush3.bf16.msra.mxu1 %v2159_v61  ;;  %v796_v12 = vpop.f32.mrb[31].mxu0 }
 0x2d9   :  { %v972_v13 = vand.u32 4294901760, %v2706_v63  ;;  %v984_v14 = vand.u32 4294901760, %v2710_v1  ;;  %v881_v15 = vand.u32 4294901760, %v841_v3  ;;  %v797_v16 = vadd.f32 %v796_v12, %v604_v37  ;;  %2115 = vmatpush3.bf16.msra.mxu0 %v2708_v0  ;;  %2161 = vmatprep.subr.bf16.mxu1 %v2297_v59  ;;  %v629_v37 = vpop.permute.xlu1 %628 }
 0x2da   :  { %v2721_v17 = vsub.f32 %v2698_v57, %v2927_v8  ;;  %v2723_v18 = vsub.f32 %v842_v58, %v884_v9  ;;  %v844_v19 = vmax.f32 %v802_v10, 0.0  ;;  %v2162_v20 = vpack.c.bf16 %v2698_v57, %v2710_v1  ;;  %2116 = vmatprep.subr.bf16.mxu0 %v2297_v59 }
 0x2db   :  { %v2731_v22 = vsub.f32 %v2710_v1, %v984_v14  ;;  %v2733_v26 = vpack.c.bf16 %v884_v9, %v881_v15  ;;  %v2735_v27 = vsub.f32 %v841_v3, %v881_v15  ;;  %v843_v29 = vmax.f32 %v797_v16, 0.0  ;;  %v1832_v30 = vpop.f32.mrb[32].mxu0 }
 0x2dc   :  { %v993_v31 = vand.u32 4294901760, %v2721_v17  ;;  %v2925_v32 = vand.u32 4294901760, %v2723_v18  ;;  %v890_v34 = vand.u32 4294901760, %v844_v19  ;;  %v812_v35 = vadd.f32 %v1832_v30, %v619_v62  ;;  %2163 = vmatpush3.bf16.msra.mxu1 %v2162_v20  ;;  %v806_v36 = vpop.f32.mrb[33].mxu0 }
 0x2dd   :  { %v986_v40 = vand.u32 4294901760, %v2731_v22  ;;  %v2926_v45 = vand.u32 4294901760, %v2735_v27  ;;  %v887_v46 = vand.u32 4294901760, %v843_v29  ;;  %v807_v49 = vadd.f32 %v806_v36, %v614_v6  ;;  %2118 = vmatpush3.bf16.msra.mxu0 %v2733_v26  ;;  %2164 = vmatprep.subr.bf16.mxu1 %v2297_v59 }
 0x2de   :  { %v2746_v51 = vsub.f32 %v2723_v18, %v2925_v32  ;;  %v2748_v54 = vsub.f32 %v844_v19, %v890_v34  ;;  %v846_v55 = vmax.f32 %v812_v35, 0.0  ;;  %v2165_v58 = vpack.c.bf16 %v2723_v18, %v2735_v27  ;;  %2119 = vmatprep.subr.bf16.mxu0 %v2297_v59 }
 0x2df   :  { %v2756_v61 = vsub.f32 %v2735_v27, %v2926_v45  ;;  %v2758_v62 = vpack.c.bf16 %v890_v34, %v887_v46  ;;  %v2760_v3 = vsub.f32 %v843_v29, %v887_v46  ;;  %v845_v4 = vmax.f32 %v807_v49, 0.0  ;;  %v1835_v6 = vpop.f32.mrb[34].mxu0  ;;  %v639_v46 = vpop.permute.xlu1 %638 }
 0x2e0   :  { %v1007_v9 = vand.u32 4294901760, %v2746_v51  ;;  %v2924_v10 = vand.u32 4294901760, %v2748_v54  ;;  %v896_v12 = vand.u32 4294901760, %v846_v55  ;;  %v822_v15 = vadd.f32 %v1835_v6, %v629_v37  ;;  %2166 = vmatpush3.bf16.msra.mxu1 %v2165_v58  ;;  %v816_v16 = vpop.f32.mrb[35].mxu0 }
 0x2e1   :  { %v1000_v19 = vand.u32 4294901760, %v2756_v61  ;;  %v2928_v20 = vand.u32 4294901760, %v2760_v3  ;;  %v893_v30 = vand.u32 4294901760, %v845_v4  ;;  %v817_v35 = vadd.f32 %v816_v16, %v624_v50  ;;  %2121 = vmatpush3.bf16.msra.mxu0 %v2758_v62  ;;  %2167 = vmatprep.subr.bf16.mxu1 %v2297_v59  ;;  %v634_v16 = vpop.permute.xlu0 %633 }
 0x2e2   :  { %v1020_v29 = vsub.f32 %v2748_v54, %v2924_v10  ;;  %v2771_v34 = vsub.f32 %v846_v55, %v896_v12  ;;  %v848_v36 = vmax.f32 %v822_v15, 0.0  ;;  %v2168_v37 = vpack.c.bf16 %v2748_v54, %v2760_v3  ;;  %2122 = vmatprep.subr.bf16.mxu0 %v2297_v59 }
 0x2e3   :  { %v1013_v49 = vsub.f32 %v2760_v3, %v2928_v20  ;;  %v2779_v50 = vpack.c.bf16 %v896_v12, %v893_v30  ;;  %v2781_v58 = vsub.f32 %v845_v4, %v893_v30  ;;  %v847_v61 = vmax.f32 %v817_v35, 0.0  ;;  %v1838_v6 = vpop.f32.mrb[36].mxu0 }
 0x2e4   :  { %v1021_v55 = vand.u32 4294901760, %v1020_v29  ;;  %v1033_v15 = vand.u32 4294901760, %v2771_v34  ;;  %v902_v11 = vand.u32 4294901760, %v848_v36  ;;  %v832_v60 = vadd.f32 %v1838_v6, %v639_v46  ;;  %2169 = vmatpush3.bf16.msra.mxu1 %v2168_v37  ;;  %v826_v41 = vpop.f32.mrb[37].mxu0 }
 0x2e5   :  { %v1014_v10 = vand.u32 4294901760, %v1013_v49  ;;  %v1026_v32 = vand.u32 4294901760, %v2781_v58  ;;  %v899_v45 = vand.u32 4294901760, %v847_v61  ;;  %v827_v8 = vadd.f32 %v826_v41, %v634_v16  ;;  %2124 = vmatpush3.bf16.msra.mxu0 %v2779_v50  ;;  %2170 = vmatprep.subr.bf16.mxu1 %v2297_v59 }
 0x2e6   :  { %v1034_v4 = vsub.f32 %v2771_v34, %v1033_v15  ;;  %v1046_v12 = vsub.f32 %v848_v36, %v902_v11  ;;  %v850_v30 = vmax.f32 %v832_v60, 0.0  ;;  %v2171_v35 = vpack.c.bf16 %v2771_v34, %v2781_v58  ;;  %2125 = vmatprep.subr.bf16.mxu0 %v2297_v59 }
 0x2e7   :  { %v1027_v29 = vsub.f32 %v2781_v58, %v1026_v32  ;;  %v2792_v37 = vpack.c.bf16 %v902_v11, %v899_v45  ;;  %v1039_v46 = vsub.f32 %v847_v61, %v899_v45  ;;  %v849_v49 = vmax.f32 %v827_v8, 0.0 }
 0x2e8   :  { %v1035_v41 = vand.u32 4294901760, %v1034_v4  ;;  %v1047_v6 = vand.u32 4294901760, %v1046_v12  ;;  %v908_v16 = vand.u32 4294901760, %v850_v30  ;;  %2172 = vmatpush3.bf16.msra.mxu1 %v2171_v35  ;;  %v2132_v60 = vpack.c.bf16 %v965_v47, %v958_v52 }
 0x2e9   :  { %v1028_v36 = vand.u32 4294901760, %v1027_v29  ;;  %v1040_v20 = vand.u32 4294901760, %v1039_v46  ;;  %v905_v34 = vand.u32 4294901760, %v849_v49  ;;  %2127 = vmatpush3.bf16.msra.mxu0 %v2792_v37  ;;  %2173 = vmatprep.subr.bf16.mxu1 %v2297_v59  ;;  %v2174_v11 = vpack.c.bf16 %v1046_v12, %v1039_v46 }
 0x2ea   :  { %v1048_v58 = vsub.f32 %v1046_v12, %v1047_v6  ;;  %v1060_v45 = vsub.f32 %v850_v30, %v908_v16  ;;  %2128 = vmatprep.subr.bf16.mxu0 %v2297_v59  ;;  %v2135_v42 = vpack.c.bf16 %v979_v7, %v972_v13  ;;  %v2138_v38 = vpack.c.bf16 %v993_v31, %v986_v40 }
 0x2eb   :  { %v1041_v47 = vsub.f32 %v1039_v46, %v1040_v20  ;;  %v2809_v52 = vpack.c.bf16 %v908_v16, %v905_v34  ;;  %v1053_v8 = vsub.f32 %v849_v49, %v905_v34  ;;  %v2141_v61 = vpack.c.bf16 %v1007_v9, %v1000_v19 }
 0x2ec   :  { %v1049_v4 = vand.u32 4294901760, %v1048_v58  ;;  %v1061_v12 = vand.u32 4294901760, %v1060_v45  ;;  %2175 = vmatpush3.bf16.msra.mxu1 %v2174_v11  ;;  %v2144_v30 = vpack.c.bf16 %v1021_v55, %v1014_v10  ;;  %v2147_v63 = vpack.c.bf16 %v1035_v41, %v1028_v36 }
 0x2ed   :  { %v1042_v35 = vand.u32 4294901760, %v1041_v47  ;;  %v1054_v56 = vand.u32 4294901760, %v1053_v8  ;;  %2130 = vmatpush3.bf16.msra.mxu0 %v2809_v52  ;;  %2176 = vmatprep.subr.bf16.mxu1 %v2297_v59  ;;  %v2177_v7 = vpack.c.bf16 %v1060_v45, %v1053_v8  ;;  %v2204_v13 = vpack.c.bf16 %v963_v28, %v956_v33 }
 0x2ee   :  { %v1062_v17 = vsub.f32 %v1060_v45, %v1061_v12  ;;  %2131 = vmatprep.subr.bf16.mxu0 %v2297_v59  ;;  %v2207_v22 = vpack.c.bf16 %v977_v48, %v970_v53  ;;  %v2929_v31 = vand.u32 4294901760, %v2698_v57  ;;  %v2930_v51 = vand.u32 4294901760, %v2735_v27  ;;  %v856_v27 = vpop.permute.xlu0 %855 }
 0x2ef   :  { %v2931_v25 = vand.u32 4294901760, %v2723_v18  ;;  %v1055_v21 = vsub.f32 %v1053_v8, %v1054_v56  ;;  %v2150_v28 = vpack.c.bf16 %v1049_v4, %v1042_v35  ;;  %v2932_v33 = vand.u32 4294901760, %v2760_v3 }
 0x2f0   :  { %v2210_v40 = vpack.c.bf16 %v2929_v31, %v984_v14  ;;  %v2933_v10 = vand.u32 4294901760, %v2748_v54  ;;  %v2219_v19 = vpack.c.bf16 %v1033_v15, %v1026_v32  ;;  %v1063_v39 = vand.u32 4294901760, %v1062_v17  ;;  %2178 = vmatpush3.bf16.msra.mxu1 %v2177_v7 }
 0x2f1   :  { %v2213_v9 = vpack.c.bf16 %v2931_v25, %v2930_v51  ;;  %v2934_v48 = vand.u32 4294901760, %v2658_v23  ;;  %v2222_v53 = vpack.c.bf16 %v1047_v6, %v1040_v20  ;;  %v2225_v57 = vpack.c.bf16 %v1061_v12, %v1054_v56  ;;  %2179 = vmatprep.subr.bf16.mxu1 %v2297_v59 }
 0x2f2   :  { %v2216_v44 = vpack.c.bf16 %v2933_v10, %v2932_v33  ;;  %v1056_v1 = vand.u32 4294901760, %v1055_v21  ;;  %v2935_v14 = vmov 0.0   ;;  %v2936_v23 = vand.u32 4294901760, %v2650_v5 }
 0x2f3   :  { %1872 = vmatmul.mubr.f32.vlgmr.msra.gmra.mrb[38].mxu0 %v2934_v48  ;;  %1942 = vmatmul.mubr.f32.vlgmr.msra.gmra.mrb[0].mxu1 %v2650_v5 }
 0x2f4   :  { %2133 = vmatpush3.bf16.msra.mxu0 %v2132_v60  ;;  %1906 = vmatprep.mubr.msk.f32.mxu0 %vm2298_vm6, %v2935_v14  ;;  %v2153_v18 = vpack.c.bf16 %v1063_v39, %v1056_v1 }
 0x2f5   :  { %2134 = vmatprep.subr.bf16.mxu0 %v2297_v59  ;;  %2181 = vmatpush3.bf16.msra.mxu1 %v2660_v24 }
 0x2f6   :  { %1976 = vmatprep.mubr.msk.f32.mxu1 %vm2298_vm6, %v2935_v14  ;;  %2182 = vmatprep.subr.bf16.mxu1 %v2297_v59 }
 0x2f8   :  { %2136 = vmatpush3.bf16.msra.mxu0 %v2135_v42 }
 0x2f9   :  { %2137 = vmatprep.subr.bf16.mxu0 %v2297_v59  ;;  %2184 = vmatpush3.bf16.msra.mxu1 %v2683_v43 }
 0x2fa   :  { %2185 = vmatprep.subr.bf16.mxu1 %v2297_v59 }
 0x2fc   :  { %2139 = vmatpush3.bf16.msra.mxu0 %v2138_v38 }
 0x2fd   :  { %2140 = vmatprep.subr.bf16.mxu0 %v2297_v59  ;;  %2187 = vmatpush3.bf16.msra.mxu1 %v2708_v0 }
 0x2fe   :  { %2188 = vmatprep.subr.bf16.mxu1 %v2297_v59 }
 0x300   :  { %2142 = vmatpush3.bf16.msra.mxu0 %v2141_v61 }
 0x301   :  { %2143 = vmatprep.subr.bf16.mxu0 %v2297_v59  ;;  %2190 = vmatpush3.bf16.msra.mxu1 %v2733_v26 }
 0x302   :  { %2191 = vmatprep.subr.bf16.mxu1 %v2297_v59 }
 0x304   :  { %2145 = vmatpush3.bf16.msra.mxu0 %v2144_v30 }
 0x305   :  { %2146 = vmatprep.subr.bf16.mxu0 %v2297_v59  ;;  %2193 = vmatpush3.bf16.msra.mxu1 %v2758_v62 }
 0x306   :  { %2194 = vmatprep.subr.bf16.mxu1 %v2297_v59 }
 0x308   :  { %2148 = vmatpush3.bf16.msra.mxu0 %v2147_v63 }
 0x309   :  { %2149 = vmatprep.subr.bf16.mxu0 %v2297_v59  ;;  %2196 = vmatpush3.bf16.msra.mxu1 %v2779_v50 }
 0x30a   :  { %2197 = vmatprep.subr.bf16.mxu1 %v2297_v59 }
 0x30c   :  { %2151 = vmatpush3.bf16.msra.mxu0 %v2150_v28 }
 0x30d   :  { %2152 = vmatprep.subr.bf16.mxu0 %v2297_v59  ;;  %2199 = vmatpush3.bf16.msra.mxu1 %v2792_v37 }
 0x30e   :  { %2200 = vmatprep.subr.bf16.mxu1 %v2297_v59 }
 0x310   :  { %2154 = vmatpush3.bf16.msra.mxu0 %v2153_v18 }
 0x311   :  { %2202 = vmatpush3.bf16.msra.mxu1 %v2809_v52 }
 0x312   :  { %2203 = vmatprep.subr.bf16.mxu1 %v2297_v59 }
 0x313   :  { %1907 = vmatmul.mubr.f32.vlgmr.msra.gmra.mrb[38].mxu0 %v2647_v2 }
 0x314   :  { %1977 = vmatmul.mubr.f32.vlgmr.msra.gmra.mrb[0].mxu1 %v2936_v23 }
 0x315   :  { %2205 = vmatpush3.bf16.msra.mxu1 %v2204_v13  ;;  %2011 = vmatprep.mubr.msk.f32.mxu1 %vm2298_vm6, %v2935_v14 }
 0x316   :  { %2206 = vmatprep.subr.bf16.mxu1 %v2297_v59 }
 0x319   :  { %2208 = vmatpush3.bf16.msra.mxu1 %v2207_v22 }
 0x31a   :  { %2209 = vmatprep.subr.bf16.mxu1 %v2297_v59 }
 0x31d   :  { %2211 = vmatpush3.bf16.msra.mxu1 %v2210_v40 }
 0x31e   :  { %2212 = vmatprep.subr.bf16.mxu1 %v2297_v59 }
 0x321   :  { %2214 = vmatpush3.bf16.msra.mxu1 %v2213_v9 }
 0x322   :  { %2215 = vmatprep.subr.bf16.mxu1 %v2297_v59 }
 0x325   :  { %2217 = vmatpush3.bf16.msra.mxu1 %v2216_v44 }
 0x326   :  { %2218 = vmatprep.subr.bf16.mxu1 %v2297_v59 }
 0x329   :  { %2220 = vmatpush3.bf16.msra.mxu1 %v2219_v19 }
 0x32a   :  { %2221 = vmatprep.subr.bf16.mxu1 %v2297_v59 }
 0x32d   :  { %2223 = vmatpush3.bf16.msra.mxu1 %v2222_v53 }
 0x32e   :  { %2224 = vmatprep.subr.bf16.mxu1 %v2297_v59 }
 0x331   :  { %2226 = vmatpush3.bf16.msra.mxu1 %v2225_v57 }
 0x332   :  { %2227 = vmatprep.subr.bf16.mxu1 %v2297_v59 }
 0x334   :  { %2012 = vmatmul.mubr.f32.vlgmr.msra.gmra.mrb[0].mxu1 %v2647_v2 }
 0x335   :  { %2229 = vmatpush3.bf16.msra.mxu1 %v2660_v24  ;;  %2046 = vmatprep.mubr.msk.f32.mxu1 %vm2298_vm6, %v2935_v14 }
 0x336   :  { %2230 = vmatprep.subr.bf16.mxu1 %v2297_v59 }
 0x339   :  { %2232 = vmatpush3.bf16.msra.mxu1 %v2683_v43  ;;  %v858_v43 = vlaneseq }
 0x33a   :  { %2233 = vmatprep.subr.bf16.mxu1 %v2297_v59 }
 0x33d   :  { %2235 = vmatpush3.bf16.msra.mxu1 %v2708_v0  ;;  %v859_v0 = vshrl.u32 %v858_v43, 7 }
 0x33e   :  { %2236 = vmatprep.subr.bf16.mxu1 %v2297_v59 }
 0x341   :  { %2238 = vmatpush3.bf16.msra.mxu1 %v2733_v26  ;;  %v860_v26 = vsub.s32 0, %v859_v0 }
 0x342   :  { %2239 = vmatprep.subr.bf16.mxu1 %v2297_v59 }
 0x343   :  { %v861_v32 = vrot.slane %v856_v27, %v860_v26 }
 0x345   :  { %2241 = vmatpush3.bf16.msra.mxu1 %v2758_v62 }
 0x346   :  { %2242 = vmatprep.subr.bf16.mxu1 %v2297_v59 }
 0x349   :  { %2244 = vmatpush3.bf16.msra.mxu1 %v2779_v50 }
 0x34a   :  { %2245 = vmatprep.subr.bf16.mxu1 %v2297_v59 }
 0x34d   :  { %2247 = vmatpush3.bf16.msra.mxu1 %v2792_v37 }
 0x34e   :  { %2248 = vmatprep.subr.bf16.mxu1 %v2297_v59 }
 0x351   :  { %2250 = vmatpush3.bf16.msra.mxu1 %v2809_v52 }
 0x354   :  { %2047 = vmatmul.mubr.f32.vlgmr.msra.gmra.mrb[0].mxu1 %v2647_v2 }
 0x3e6   :  { %v1100_v5 = vpop.f32.mrb[38].mxu0 }
 0x3e7   :  { %v1908_v24 = vpop.f32.mrb[39].mxu0  ;;  %v2251_v54 = vadd.f32 %v1100_v5, %v861_v32 }
 0x427   :  { %v1499_v62 = vpop.f32.mrb[0].mxu1 }
 0x428   :  { %v2252_v3 = vadd.f32 %v2251_v54, %v1499_v62  ;;  %v2048_v20 = vpop.f32.mrb[1].mxu1 }
 0x42a   :  { %2269 = vtanh.f32 %v2252_v3 }
 0x434   :  { %v2270_v59 = vpop.eup %2269 }
 0x435   :  { %1504 = vst [vmem:[#allocation3] sm:$0x1] %v2270_v59 }
 0x436   :  { %2282 = shalt.err (!%p2279_p4)
}
 0x437   :  { %s2283_s24 = scalar_lea.hbm %s2920_s9, 16 }
 0x438   :  { %p2284_p5 = scmp.ne.s32.totalorder %s2920_s9, %s2283_s24  ;;  %p2287_p6 = scmp.lt.u32.totalorder %s2283_s24, %s2920_s9 }
 0x43a   :  { %p2289_p7 = pnand %p2287_p6, %p2284_p5 }
 0x43c   :  { %2292 = shalt.err (!%p2289_p7)
}
 0x43d   :  { %1514 = dma.vmem_to_hbm [thread:$0]  %s1512_s21, 16, %s2920_s9, [#allocation4]  }
 0x43e   :  { %2293 = dma.done.wait [#allocation4], 16  }
 0x43f   :  { %2294 = vsyncadd [#allocation4], 4294967280 }
 0x440   :  { %1518 = vsyncpa [#allocation4], 1 }

</bundles_post_ra>
